<compile_context>
chip_gen: v7x
topology: tpu7x:2x2x1
jax: 0.10.0
libtpu: 0.0.40
codegen_flags: <defaults>
</compile_context>

<pallas_src>
import jax
import jax.numpy as jnp
from jax import lax
from jax.experimental import pallas as pl
from jax.experimental.pallas import tpu as pltpu


def ca_fused_kernel(wc_ref, char_ref, out_ref):
    """One N-tile of the folded CA forward.

    wc_ref   : (1, P+1)  resident [w_eff | c]  (w_eff = Wb @ factor^T, c = bb @ factor^T)
    char_ref : (tm, P)   streamed tile of characteristics
    out_ref  : (1, tm)   lane-dense output row tile
    """
    p = char_ref.shape[1]
    w_eff = wc_ref[:, :p]      # (1, P)
    c = wc_ref[:, p:]          # (1, 1)
    # out[0, n] = sum_p w_eff[p] * char[n, p] + c     (lane-dense (1, tm) row)
    # dot_general contracting (1,1) == pl.dot(w_eff, char, trans_b=True):
    # MXU matmul with the streamed operand as the moving operand (no XLU
    # transpose of the char tile).
    out_ref[...] = lax.dot_general(
        w_eff, char_ref[...], (((1,), (1,)), ((), ())),
        preferred_element_type=jnp.float32) + c


def ca_forward(char, pfret, wb, bb, wf, bf, *, block_n=16384):
    """Fused CA forward.  char: (N, P) f32, pfret: (1, P) f32 -> (N,) f32."""
    N, P = char.shape
    K = wb.shape[1]
    assert pfret.shape == (1, P)
    assert wb.shape == (P, K) and wf.shape == (P, K)
    assert bb.shape == (1, K) and bf.shape == (1, K)
    assert block_n % 128 == 0, "tiled output lane-dim must be a multiple of 128"

    f32 = jnp.float32
    char = char.astype(f32)

    # Grid-invariant factor math, hoisted out of the kernel (tiny O(P*K)).
    #   out[n] = char[n,:] @ w_eff^T + c   with
    #   factor = pfret @ Wf + bf, w_eff = factor @ Wb^T, c = factor @ bb^T.
    factor = pfret.astype(f32) @ wf.astype(f32) + bf.astype(f32)   # (1, K)
    w_eff = factor @ wb.astype(f32).T                              # (1, P)
    c = factor @ bb.astype(f32).T                                  # (1, 1)
    wc = jnp.concatenate([w_eff, c], axis=1)                       # (1, P+1)

    if N <= block_n:
        # Single full-array tile (exempt from the (8,128) divisibility rule).
        tm = N
        grid = (1,)
    else:
        # Tile over N; NO padding copy.  The ragged last block is handled by
        # Pallas: out-of-bounds char rows feed only out columns >= N, and
        # those out-of-bounds output writes are discarded.
        tm = block_n
        grid = (pl.cdiv(N, tm),)

    # VMEM budget: double-buffered char tile (lanes padded to 128), output
    # row tile (sublanes padded to 8), resident wc, plus compiler headroom.
    lane_p = ((P + 127) // 128) * 128
    char_buf = tm * lane_p * 4
    out_buf = 8 * tm * 4
    wc_buf = 8 * 128 * 4
    vmem_limit = max(2 * (char_buf + out_buf + wc_buf) + 8 * 1024 * 1024,
                     16 * 1024 * 1024)

    out = pl.pallas_call(
        ca_fused_kernel,
        out_shape=jax.ShapeDtypeStruct((1, N), f32),
        grid_spec=pltpu.PrefetchScalarGridSpec(
            num_scalar_prefetch=0,
            grid=grid,
            in_specs=[
                pl.BlockSpec((1, P + 1), lambda i: (0, 0)),   # [w_eff | c] (resident)
                pl.BlockSpec((tm, P), lambda i: (i, 0)),      # char tile (streamed)
            ],
            out_specs=pl.BlockSpec((1, tm), lambda i: (0, i)),
        ),
        compiler_params=pltpu.CompilerParams(
            dimension_semantics=("parallel",),
            vmem_limit_bytes=int(vmem_limit),
        ),
    )(wc, char)
    return out[0]


# jit-wrapped entry point (block_n is a static tiling knob).
ca_forward_jit = jax.jit(ca_forward, static_argnames=("block_n",))


def ca_forward_ref(char, pfret, wb, bb, wf, bf):
    beta = char @ wb + bb
    factor = pfret @ wf + bf
    return jnp.sum(beta * factor, axis=1)


if __name__ == "__main__":
    # Small shapes consistent with the model: N portfolios, P characteristics,
    # K latent factors.
    N, P, K = 16, 32, 8

    key = jax.random.PRNGKey(0)
    k_char, k_pfret, k_wb, k_bb, k_wf, k_bf = jax.random.split(key, 6)

    char = jax.random.normal(k_char, (N, P), dtype=jnp.float32)
    pfret = jax.random.normal(k_pfret, (1, P), dtype=jnp.float32)

    # Deterministic "Linear" parameters (beta_nn and factor_nn).
    wb = jax.random.normal(k_wb, (P, K), dtype=jnp.float32) * 0.1
    bb = jax.random.normal(k_bb, (1, K), dtype=jnp.float32) * 0.1
    wf = jax.random.normal(k_wf, (P, K), dtype=jnp.float32) * 0.1
    bf = jax.random.normal(k_bf, (1, K), dtype=jnp.float32) * 0.1

    # 1) Small-N path (single full-array tile).
    out = jax.block_until_ready(ca_forward_jit(char, pfret, wb, bb, wf, bf))
    ref = ca_forward_ref(char, pfret, wb, bb, wf, bf)
    assert out.shape == (N,)
    assert jnp.allclose(out, ref, atol=1e-4, rtol=1e-4), (out, ref)

    # 2) Larger N, still a single tile under the (large) default block_n.
    N2 = 300
    char2 = jax.random.normal(jax.random.PRNGKey(1), (N2, P), dtype=jnp.float32)
    out2 = jax.block_until_ready(ca_forward_jit(char2, pfret, wb, bb, wf, bf))
    ref2 = ca_forward_ref(char2, pfret, wb, bb, wf, bf)
    assert out2.shape == (N2,)
    assert jnp.allclose(out2, ref2, atol=1e-4, rtol=1e-4), (out2, ref2)

    # 3) Tiled path with a ragged last block (no padding copy): 300 = 2*128 + 44.
    out3 = jax.block_until_ready(
        ca_forward_jit(char2, pfret, wb, bb, wf, bf, block_n=128))
    assert out3.shape == (N2,)
    assert jnp.allclose(out3, ref2, atol=1e-4, rtol=1e-4), (out3, ref2)

    print("KERNEL_OK")
</pallas_src>

<mosaic_0001>
module attributes {stable_mosaic.version = 11 : i64} {
  func.func @ca_fused_kernel(%arg0: i32, %arg1: memref<1x33xf32, #tpu.memory_space<vmem>>, %arg2: memref<16x32xf32, #tpu.memory_space<vmem>>, %arg3: memref<1x16xf32, #tpu.memory_space<vmem>>) attributes {dimension_semantics = [#tpu.dimension_semantics<parallel>], iteration_bounds = array<i64: 1>, scalar_prefetch = 0 : i64, scratch_operands = 0 : i64, tpu.core_type = #tpu.core_type<tc>, window_params = [{pipeline_mode = #tpu.pipeline_mode<synchronous>, transform_indices = @transform_0, window_bounds = array<i64: 1, 33>}, {transform_indices = @transform_1, window_bounds = array<i64: 16, 32>}, {transform_indices = @transform_2, window_bounds = array<i64: 1, 16>}]} {
    %c0 = arith.constant 0 : index
    %c0_0 = arith.constant 0 : index
    %0 = vector.load %arg1[%c0, %c0_0] : memref<1x33xf32, #tpu.memory_space<vmem>>, vector<1x32xf32>
    %c0_1 = arith.constant 0 : index
    %c32 = arith.constant 32 : index
    %1 = vector.load %arg1[%c0_1, %c32] : memref<1x33xf32, #tpu.memory_space<vmem>>, vector<1x1xf32>
    %c0_2 = arith.constant 0 : index
    %c0_3 = arith.constant 0 : index
    %2 = vector.load %arg2[%c0_2, %c0_3] : memref<16x32xf32, #tpu.memory_space<vmem>>, vector<16x32xf32>
    %cst = arith.constant dense<0.000000e+00> : vector<1x16xf32>
    %3 = tpu.matmul %0, %2, %cst {dimension_numbers = #tpu.dot_dimension_numbers<[1], [1], [0], [0], [0, 0, 1, 0], [], []>} : vector<1x32xf32>, vector<16x32xf32>, vector<1x16xf32> -> vector<1x16xf32>
    %4 = vector.broadcast %1 : vector<1x1xf32> to vector<1x16xf32>
    %5 = arith.addf %3, %4 : vector<1x16xf32>
    %c0_4 = arith.constant 0 : index
    %c0_5 = arith.constant 0 : index
    %6 = vector.load %arg3[%c0_4, %c0_5] : memref<1x16xf32, #tpu.memory_space<vmem>>, vector<1x16xf32>
    tpu.vector_store %arg3[%c0_4, %c0_5], %5 {strides = array<i32>} : memref<1x16xf32, #tpu.memory_space<vmem>>, vector<1x16xf32>,
    return
  }
  func.func @transform_0(%arg0: i32) -> (i32, i32) {
    %c0_i32 = arith.constant 0 : i32
    %c0_i32_0 = arith.constant 0 : i32
    %c0_i32_1 = arith.constant 0 : i32
    return %c0_i32, %c0_i32_0 : i32, i32
  }
  func.func @transform_1(%arg0: i32) -> (i32, i32) {
    %c0_i32 = arith.constant 0 : i32
    %c0_i32_0 = arith.constant 0 : i32
    return %arg0, %c0_i32 : i32, i32
  }
  func.func @transform_2(%arg0: i32) -> (i32, i32) {
    %c0_i32 = arith.constant 0 : i32
    %c0_i32_0 = arith.constant 0 : i32
    return %c0_i32, %arg0 : i32, i32
  }
}

</mosaic_0001>

<bundles_post_ra>
// kernel: ca_forward.1
= control target key start
LH: loop header
LB: loop body
LE: loop exit
PB: predicated region body
PF: predicated region fallthrough
CT: control target
= control target key end

     0   :  { %vm24_vm0 = vcmask 261120   ;;  %v166_v2 = vmov 0.0|0.0   ;;  %vm167_vm2 = vmmov 0   ;;  %v168_v4 = vmov 0.0   ;;  %s207_s0 = inlined_call_operand.vmem [shape: f32[1,33], index: 0, kind: input, shape index: {}]   ;;  %s208_s1 = inlined_call_operand.vmem [shape: f32[16,32], index: 1, kind: input, shape index: {}]   ;;  %s209_s2 = inlined_call_operand.hbm [shape: f32[1,16], index: 2, kind: output, shape index: {}]  }
   0x1   :  { %v13_v0 = vld [vmem:[%s208_s1] sm:$0xff]  ;;  %v14_v1 = vld [vmem:[%s208_s1 + $0x8] sm:$0xff]  ;;  %132 = vmatprep.subr.bf16.mxu0 %v166_v2  ;;  %vm134_vm1 = vmpackc.low %vm24_vm0, %vm24_vm0  ;;  %129 = vmatprep.mubr.msk.f32.mxu0 %vm167_vm2, %v168_v4  ;;  %v169_v6 = vmov 32  }
   0x2   :  { %v133_v3 = vpack.c.bf16 %v14_v1, %v13_v0  ;;  %v12_v5 = vld [vmem:[%s207_s0] sm:$0x1]  ;;  %141 = vset.pattern.permute.xlu0 %v169_v6 }
   0x3   :  { %7 = vsyncpa [#allocation3], 0  ;;  %17 = vperm.xlu0 %141, %v12_v5   ;;  %v20_v7 = vlaneseq  ;;  %s170_s1 = smov [#allocation2]   ;;  %vm103_vm3 = vcmask 122880  }
   0x4   :  { %135 = vmatpush3.bf16.xpose.msk.msra.mxu0 %vm134_vm1, %v133_v3  ;;  %s111_s15 = sshll.u32 %s170_s1, 4  ;;  %s112_s15 = int_to_ptr.vmem [resolvable:$true] %s111_s15 }
   0x5   :  { %v21_v8 = vshrl.u32 %v20_v7, 7  ;;  %s142_s0 = scalar_lea.vmem %s112_s15, 16  ;;  %s146_s16 = scalar_lea.vmem %s112_s15, 32 }
   0x6   :  { %p143_p0 = scmp.ne.s32.totalorder %s112_s15, %s142_s0  ;;  %p147_p1 = scmp.lt.s32.totalorder %s112_s15, %s112_s15 }
   0x7   :  { %v22_v9 = vsub.s32 0, %v21_v8  ;;  %p148_p2 = scmp.lt.s32.totalorder %s146_s16, %s142_s0 }
   0x9   :  { %p149_p3 = por %p148_p2, %p147_p1 }
   0xb   :  { %130 = vmatmul.mubr.msk.f32.vlgmr.msra.gmra.mrb[0].mxu0 %vm24_vm0, %v12_v5  ;;  %p150_p4 = pnand %p149_p3, %p143_p0 }
  0x82   :  { %v18_v10 = vpop.permute.xlu0 %17 }
  0x83   :  { %v23_v11 = vrot.slane %v18_v10, %v22_v9 }
  0xde   :  { %v99_v12 = vpop.f32.mrb[0].mxu0 }
  0xdf   :  { %v100_v13 = vadd.f32 %v99_v12, %v23_v11  ;;  %v131_v14 = vpop.f32.mrb[1].mxu0 }
  0xe1   :  { %104 = vst.msk [vmem:[#allocation2] sm:$0x1] %vm103_vm3, %v100_v13 }
  0xe2   :  { %153 = shalt.err (!%p150_p4)
}
  0xe3   :  { %s154_s19 = scalar_lea.hbm %s209_s2, 16 }
  0xe4   :  { %p155_p5 = scmp.ne.s32.totalorder %s209_s2, %s154_s19  ;;  %p158_p6 = scmp.lt.u32.totalorder %s154_s19, %s209_s2 }
  0xe6   :  { %p160_p7 = pnand %p158_p6, %p155_p5 }
  0xe8   :  { %163 = shalt.err (!%p160_p7)
}
  0xe9   :  { %114 = dma.vmem_to_hbm [thread:$0]  %s112_s15, 16, %s209_s2, [#allocation3]  }
  0xea   :  { %164 = dma.done.wait [#allocation3], 16  }
  0xeb   :  { %165 = vsyncadd [#allocation3], 4294967280 }
  0xec   :  { %118 = vsyncpa [#allocation3], 1 }

</bundles_post_ra>
